<compile_context>
chip_gen: v7x
topology: tpu7x:2x2x1
jax: 0.10.0
libtpu: 0.0.40
codegen_flags: <defaults>
</compile_context>

<pallas_src>
import jax
import jax.numpy as jnp
from jax.experimental import pallas as pl
from jax.experimental.pallas import tpu as pltpu

BN_EPS = 1e-5
LEAKY_SLOPE = 0.2


def _round_up(x, m):
    return (x + m - 1) // m * m


def _vmem_limit_bytes():
    """Per-generation scoped-VMEM budget (v5e/v6e: 128 MiB phys, v7x: 64 MiB)."""
    try:
        cap = int(pltpu.get_tpu_info().vmem_capacity_bytes)
    except Exception:
        cap = 64 * 1024 * 1024
    return max(16 * 1024 * 1024, min(cap // 2, 96 * 1024 * 1024))


# ---------- pass 1: conv-as-matmul (K-tiled) + per-tile BN partial stats -----
def conv_stats_kernel(p_ref, w_ref, y_ref, stats_ref, acc_ref):
    # p_ref: (TM, TK) bf16 im2col patches (padded rows/cols are zero)
    # w_ref: (TK, C_PAD) bf16 flattened weight (padded rows/cols are zero)
    # y_ref: (TM, C_PAD) bf16 pre-BN conv output
    # stats_ref: (8, C_PAD) f32; row 0 = sum(y), row 1 = sum(y*y) of this tile
    # acc_ref: (TM, C_PAD) f32 VMEM accumulator (persists across the K axis)
    kk = pl.program_id(1)

    @pl.when(kk == 0)
    def _():
        acc_ref[...] = jnp.zeros_like(acc_ref)

    acc_ref[...] += jnp.dot(p_ref[...], w_ref[...],
                            preferred_element_type=jnp.float32)

    @pl.when(kk == pl.num_programs(1) - 1)
    def _():
        y = acc_ref[...]                       # f32 accumulator
        y_ref[...] = y.astype(y_ref.dtype)     # bf16 store (half the HBM bytes)
        # Stats from the f32 accumulator (NOT the bf16 store) -> unbiased.
        stats_ref[0:1, :] = jnp.sum(y, axis=0, keepdims=True)
        stats_ref[1:2, :] = jnp.sum(y * y, axis=0, keepdims=True)
        # rows 2..7 are never read downstream; leave them untouched.


# ---------- pass 2: fused BN affine (folded scale/shift) + LeakyReLU ---------
def bn_act_kernel(y_ref, ss_ref, o_ref):
    # y_ref: (TM2, C_PAD) bf16; ss_ref: (8, C_PAD) f32 (row0=scale, row1=shift)
    z = y_ref[...].astype(jnp.float32) * ss_ref[0:1, :] + ss_ref[1:2, :]
    o_ref[...] = jnp.maximum(z, LEAKY_SLOPE * z)   # slope in (0,1) -> LeakyReLU


def _im2col(x):
    """x: (N, C, H, W) f32 -> patches (N*OH*OW, C*16) for k=4, s=2, p=1."""
    n, c, h, w = x.shape
    oh, ow = h // 2, w // 2
    xp = jnp.pad(x, ((0, 0), (0, 0), (1, 1), (1, 1)))
    cols = []
    for kh in range(4):
        for kw in range(4):
            cols.append(xp[:, :, kh:kh + 2 * oh:2, kw:kw + 2 * ow:2])
    patches = jnp.stack(cols, axis=0)                  # (16, N, C, OH, OW)
    patches = jnp.transpose(patches, (1, 3, 4, 2, 0))  # (N, OH, OW, C, 16)
    return patches.reshape(n * oh * ow, c * 16), (n, oh, ow)


def _derive_tiles(m, k, c_out, vmem_limit):
    # Output-lane alignment: 256 when wide enough for the 2x256x256 MXU
    # (v6e/v7x); 128 otherwise (also correct for v5e's 4x128x128 MXU).
    c_pad = 128 if c_out <= 128 else _round_up(c_out, 256)
    # K tile: 512 is a multiple of both 128 (v5e) and 256 (v6e/v7x) lanes.
    tk = min(512, _round_up(k, 128))
    k_pad = _round_up(k, tk)
    # Per-step footprint (double-buffered pipeline):
    #   patches 2*tm*tk*2B + weights 2*tk*c_pad*2B + y 2*tm*c_pad*2B
    #   + stats 2*8*c_pad*4B + acc scratch tm*c_pad*4B
    budget = int(vmem_limit * 0.75)
    fixed = 4 * tk * c_pad + 64 * c_pad
    per_row = 4 * tk + 8 * c_pad
    tm = (budget - fixed) // per_row
    tm = max(128, min(tm, 1024))
    tm = (tm // 128) * 128
    tm = min(tm, _round_up(m, 128))
    m_pad = _round_up(m, tm)
    return tm, tk, k_pad, c_pad, m_pad


def down_block(x, conv_w, conv_b, bn_gamma, bn_beta):
    """x: (N, C_in, H, W) NCHW; conv_w: (C_out, C_in, 4, 4). Returns NCHW f32."""
    del conv_b  # cancelled exactly by the training-mode BN batch-mean subtraction
    c_out = conv_w.shape[0]

    patches, (n, oh, ow) = _im2col(x.astype(jnp.float32))
    m, k = patches.shape

    vmem_limit = _vmem_limit_bytes()
    tm, tk, k_pad, c_pad, m_pad = _derive_tiles(m, k, c_out, vmem_limit)
    n_tiles = m_pad // tm
    kt = k_pad // tk

    # bf16 MXU inputs; zero-padded rows/cols contribute nothing to the sums.
    patches_p = jnp.pad(patches.astype(jnp.bfloat16),
                        ((0, m_pad - m), (0, k_pad - k)))
    w_mat = conv_w.reshape(c_out, -1).T            # (K, C_out), (C_in,KH,KW) order
    w_p = jnp.pad(w_mat.astype(jnp.bfloat16),
                  ((0, k_pad - k), (0, c_pad - c_out)))

    cost = pl.CostEstimate(
        flops=2 * m_pad * k_pad * c_pad,
        transcendentals=0,
        bytes_accessed=(patches_p.size * 2 + w_p.size * 2 * n_tiles
                        + m_pad * c_pad * 2 + n_tiles * 8 * c_pad * 4))

    y, stats = pl.pallas_call(
        conv_stats_kernel,
        out_shape=(jax.ShapeDtypeStruct((m_pad, c_pad), jnp.bfloat16),
                   jax.ShapeDtypeStruct((n_tiles * 8, c_pad), jnp.float32)),
        grid=(n_tiles, kt),
        in_specs=[
            pl.BlockSpec((tm, tk), lambda i, kk: (i, kk)),
            pl.BlockSpec((tk, c_pad), lambda i, kk: (kk, 0)),
        ],
        out_specs=(pl.BlockSpec((tm, c_pad), lambda i, kk: (i, 0)),
                   pl.BlockSpec((8, c_pad), lambda i, kk: (i, 0))),
        scratch_shapes=[pltpu.VMEM((tm, c_pad), jnp.float32)],
        compiler_params=pltpu.CompilerParams(
            dimension_semantics=("parallel", "arbitrary"),
            vmem_limit_bytes=vmem_limit),
        cost_estimate=cost,
    )(patches_p, w_p)

    # Tiny cross-tile reduction + BN affine folding (c_pad-wide, plain JAX).
    stats = stats.reshape(n_tiles, 8, c_pad)
    sum_y = jnp.sum(stats[:, 0, :], axis=0)
    sum_sq = jnp.sum(stats[:, 1, :], axis=0)
    mean = sum_y / m                               # biased stats over true M
    # NOTE: E[y^2]-mean^2 in f32 can cancel badly when |mean| >> std; fine for
    # a zero-ish-mean conv output.  Switch to a Welford-style combine if not.
    var = jnp.maximum(sum_sq / m - mean * mean, 0.0)
    g_p = jnp.zeros((c_pad,), jnp.float32).at[:c_out].set(bn_gamma.astype(jnp.float32))
    b_p = jnp.zeros((c_pad,), jnp.float32).at[:c_out].set(bn_beta.astype(jnp.float32))
    scale_row = g_p * jax.lax.rsqrt(var + BN_EPS)
    shift_row = b_p - mean * scale_row
    ss = jnp.zeros((8, c_pad), jnp.float32)
    ss = ss.at[0, :].set(scale_row).at[1, :].set(shift_row)

    # pass-2 blocks: decoupled from pass-1; grow to multi-MiB lane-dense slabs
    # (double-buffered bf16 read + f32 write kept well under the VMEM budget).
    bytes_per_row2 = c_pad * (2 + 4)
    row_cap = max(128, min(8 << 20, vmem_limit // 4) // (2 * bytes_per_row2))
    tm2 = tm
    for f in range(n_tiles, 0, -1):
        if n_tiles % f == 0 and tm * f <= row_cap:
            tm2 = tm * f
            break
    n_tiles2 = m_pad // tm2

    out_flat = pl.pallas_call(
        bn_act_kernel,
        out_shape=jax.ShapeDtypeStruct((m_pad, c_pad), jnp.float32),
        grid=(n_tiles2,),
        in_specs=[
            pl.BlockSpec((tm2, c_pad), lambda i: (i, 0)),
            pl.BlockSpec((8, c_pad), lambda i: (0, 0)),
        ],
        out_specs=pl.BlockSpec((tm2, c_pad), lambda i: (i, 0)),
        compiler_params=pltpu.CompilerParams(
            dimension_semantics=("parallel",),
            vmem_limit_bytes=vmem_limit),
    )(y, ss)

    # (M_pad, C_pad) -> slice true extents -> (N, OH, OW, C_out) -> NCHW.
    # (If the consumer accepts NHWC, drop the transpose to save a relayout.)
    out = out_flat[:m, :c_out].reshape(n, oh, ow, c_out).transpose(0, 3, 1, 2)
    return out


def _reference(x, conv_w, conv_b, bn_gamma, bn_beta):
    """Pure-JAX (f32) reference of the PyTorch forward (training-mode BN)."""
    y = jax.lax.conv_general_dilated(
        x.astype(jnp.float32), conv_w.astype(jnp.float32),
        window_strides=(2, 2), padding=((1, 1), (1, 1)),
        dimension_numbers=("NCHW", "OIHW", "NCHW"))
    y = y + conv_b.reshape(1, -1, 1, 1)
    mean = jnp.mean(y, axis=(0, 2, 3), keepdims=True)
    var = jnp.mean((y - mean) ** 2, axis=(0, 2, 3), keepdims=True)
    y = (y - mean) / jnp.sqrt(var + BN_EPS)
    y = y * bn_gamma.reshape(1, -1, 1, 1) + bn_beta.reshape(1, -1, 1, 1)
    return jnp.where(y > 0, y, LEAKY_SLOPE * y)


if __name__ == "__main__":
    key = jax.random.PRNGKey(0)
    k_x, k_w, k_b = jax.random.split(key, 3)

    N, C_IN, C_OUT, H, W = 2, 4, 8, 16, 16

    x = jax.random.normal(k_x, (N, C_IN, H, W), dtype=jnp.float32)
    fan_in = C_IN * 4 * 4
    conv_w = jax.random.normal(k_w, (C_OUT, C_IN, 4, 4), jnp.float32) * (fan_in ** -0.5)
    conv_b = jax.random.normal(k_b, (C_OUT,), jnp.float32) * 0.1
    bn_gamma = jnp.ones((C_OUT,), jnp.float32)
    bn_beta = jnp.zeros((C_OUT,), jnp.float32)

    out = down_block(x, conv_w, conv_b, bn_gamma, bn_beta)
    out = jax.block_until_ready(out)

    ref = _reference(x, conv_w, conv_b, bn_gamma, bn_beta)
    assert out.shape == (N, C_OUT, H // 2, W // 2), out.shape
    # Tolerance reflects bf16 MXU inputs + bf16 y intermediate
    # (f32 accumulation, f32 stats, f32 BN/LeakyReLU).
    assert jnp.allclose(out, ref, atol=5e-2, rtol=5e-2), float(jnp.max(jnp.abs(out - ref)))

    print("KERNEL_OK")
</pallas_src>

<mosaic_0001>
module attributes {stable_mosaic.version = 11 : i64} {
  func.func @conv_stats_kernel(%arg0: i32, %arg1: i32, %arg2: memref<128x128xbf16, #tpu.memory_space<vmem>>, %arg3: memref<128x128xbf16, #tpu.memory_space<vmem>>, %arg4: memref<128x128xbf16, #tpu.memory_space<vmem>>, %arg5: memref<8x128xf32, #tpu.memory_space<vmem>>, %arg6: memref<128x128xf32, #tpu.memory_space<vmem>>) attributes {dimension_semantics = [#tpu.dimension_semantics<parallel>, #tpu.dimension_semantics<arbitrary>], iteration_bounds = array<i64: 1, 1>, scalar_prefetch = 0 : i64, scratch_operands = 1 : i64, tpu.core_type = #tpu.core_type<tc>, window_params = [{transform_indices = @transform_0, window_bounds = array<i64: 128, 128>}, {transform_indices = @transform_1, window_bounds = array<i64: 128, 128>}, {transform_indices = @transform_2, window_bounds = array<i64: 128, 128>}, {transform_indices = @transform_3, window_bounds = array<i64: 8, 128>}]} {
    %c0_i32 = arith.constant 0 : i32
    %0 = arith.cmpi eq, %arg1, %c0_i32 : i32
    %1 = arith.extui %0 : i1 to i32
    %c0_i32_0 = arith.constant 0 : i32
    %2 = arith.cmpi ne, %1, %c0_i32_0 : i32
    scf.if %2 {
      %cst_10 = arith.constant 0.000000e+00 : f32
      %12 = vector.broadcast %cst_10 : f32 to vector<128x128xf32>
      %c0_11 = arith.constant 0 : index
      %c0_12 = arith.constant 0 : index
      %13 = vector.load %arg6[%c0_11, %c0_12] : memref<128x128xf32, #tpu.memory_space<vmem>>, vector<128x128xf32>
      tpu.vector_store %arg6[%c0_11, %c0_12], %12 {strides = array<i32>} : memref<128x128xf32, #tpu.memory_space<vmem>>, vector<128x128xf32>,
    } else {
    }
    %c0 = arith.constant 0 : index
    %c0_1 = arith.constant 0 : index
    %3 = vector.load %arg6[%c0, %c0_1] : memref<128x128xf32, #tpu.memory_space<vmem>>, vector<128x128xf32>
    %c0_2 = arith.constant 0 : index
    %c0_3 = arith.constant 0 : index
    %4 = vector.load %arg2[%c0_2, %c0_3] : memref<128x128xbf16, #tpu.memory_space<vmem>>, vector<128x128xbf16>
    %c0_4 = arith.constant 0 : index
    %c0_5 = arith.constant 0 : index
    %5 = vector.load %arg3[%c0_4, %c0_5] : memref<128x128xbf16, #tpu.memory_space<vmem>>, vector<128x128xbf16>
    %cst = arith.constant dense<0.000000e+00> : vector<128x128xf32>
    %6 = tpu.matmul %4, %5, %cst {dimension_numbers = #tpu.dot_dimension_numbers<[1], [0], [0], [1], [0, 0, 1, 1], [], []>} : vector<128x128xbf16>, vector<128x128xbf16>, vector<128x128xf32> -> vector<128x128xf32>
    %7 = arith.addf %3, %6 : vector<128x128xf32>
    %c0_6 = arith.constant 0 : index
    %c0_7 = arith.constant 0 : index
    %8 = vector.load %arg6[%c0_6, %c0_7] : memref<128x128xf32, #tpu.memory_space<vmem>>, vector<128x128xf32>
    tpu.vector_store %arg6[%c0_6, %c0_7], %7 {strides = array<i32>} : memref<128x128xf32, #tpu.memory_space<vmem>>, vector<128x128xf32>,
    %c0_i32_8 = arith.constant 0 : i32
    %9 = arith.cmpi eq, %arg1, %c0_i32_8 : i32
    %10 = arith.extui %9 : i1 to i32
    %c0_i32_9 = arith.constant 0 : i32
    %11 = arith.cmpi ne, %10, %c0_i32_9 : i32
    scf.if %11 {
      %c0_10 = arith.constant 0 : index
      %c0_11 = arith.constant 0 : index
      %12 = vector.load %arg6[%c0_10, %c0_11] : memref<128x128xf32, #tpu.memory_space<vmem>>, vector<128x128xf32>
      %13 = arith.truncf %12 : vector<128x128xf32> to vector<128x128xbf16>
      %c0_12 = arith.constant 0 : index
      %c0_13 = arith.constant 0 : index
      %14 = vector.load %arg4[%c0_12, %c0_13] : memref<128x128xbf16, #tpu.memory_space<vmem>>, vector<128x128xbf16>
      tpu.vector_store %arg4[%c0_12, %c0_13], %13 {strides = array<i32>} : memref<128x128xbf16, #tpu.memory_space<vmem>>, vector<128x128xbf16>,
      %cst_14 = arith.constant dense<0.000000e+00> : vector<128xf32>
      %15 = vector.multi_reduction <add>, %12, %cst_14 [0] : vector<128x128xf32> to vector<128xf32>
      %16 = vector.shape_cast %15 : vector<128xf32> to vector<1x128xf32>
      %c0_15 = arith.constant 0 : index
      %c0_16 = arith.constant 0 : index
      %17 = vector.load %arg5[%c0_15, %c0_16] : memref<8x128xf32, #tpu.memory_space<vmem>>, vector<1x128xf32>
      tpu.vector_store %arg5[%c0_15, %c0_16], %16 {strides = array<i32>} : memref<8x128xf32, #tpu.memory_space<vmem>>, vector<1x128xf32>,
      %18 = arith.mulf %12, %12 : vector<128x128xf32>
      %cst_17 = arith.constant dense<0.000000e+00> : vector<128xf32>
      %19 = vector.multi_reduction <add>, %18, %cst_17 [0] : vector<128x128xf32> to vector<128xf32>
      %20 = vector.shape_cast %19 : vector<128xf32> to vector<1x128xf32>
      %c1 = arith.constant 1 : index
      %c0_18 = arith.constant 0 : index
      %21 = vector.load %arg5[%c1, %c0_18] : memref<8x128xf32, #tpu.memory_space<vmem>>, vector<1x128xf32>
      tpu.vector_store %arg5[%c1, %c0_18], %20 {strides = array<i32>} : memref<8x128xf32, #tpu.memory_space<vmem>>, vector<1x128xf32>,
    } else {
    }
    return
  }
  func.func @transform_0(%arg0: i32, %arg1: i32) -> (i32, i32) {
    %c0_i32 = arith.constant 0 : i32
    return %arg0, %arg1 : i32, i32
  }
  func.func @transform_1(%arg0: i32, %arg1: i32) -> (i32, i32) {
    %c0_i32 = arith.constant 0 : i32
    %c0_i32_0 = arith.constant 0 : i32
    return %arg1, %c0_i32 : i32, i32
  }
  func.func @transform_2(%arg0: i32, %arg1: i32) -> (i32, i32) {
    %c0_i32 = arith.constant 0 : i32
    %c0_i32_0 = arith.constant 0 : i32
    return %arg0, %c0_i32 : i32, i32
  }
  func.func @transform_3(%arg0: i32, %arg1: i32) -> (i32, i32) {
    %c0_i32 = arith.constant 0 : i32
    %c0_i32_0 = arith.constant 0 : i32
    return %arg0, %c0_i32 : i32, i32
  }
}

</mosaic_0001>

<bundles_post_ra>
// kernel: tpu_custom_call.1
= control target key start
LH: loop header
LB: loop body
LE: loop exit
PB: predicated region body
PF: predicated region fallthrough
CT: control target
= control target key end

     0   :  { %9 = vsyncpa [#allocation4], 0  ;;  %s912_s0 = inlined_call_operand.hbm [shape: bf16[128,128], index: 0, kind: input, shape index: {}]   ;;  %s913_s1 = inlined_call_operand.hbm [shape: bf16[128,128], index: 1, kind: input, shape index: {}]   ;;  %s914_s2 = inlined_call_operand.hbm [shape: bf16[128,128], index: 2, kind: output, shape index: {0}]   ;;  %s915_s3 = inlined_call_operand.hbm [shape: f32[8,128], index: 3, kind: output, shape index: {1}]  }
   0x1   :  { %10 = vsyncpa [#allocation7], 0 }
   0x2   :  { %11 = vsyncpa [#allocation5], 0 }
   0x3   :  { %12 = vsyncpa [#allocation10], 0  ;;  %s805_s12 = smov [#allocation3]   ;;  %s709_s16 = scalar_lea.hbm %s912_s0, 1024 }
   0x4   :  { %s18_s13 = sshll.u32 %s805_s12, 4  ;;  %p710_p0 = scmp.ne.s32.totalorder %s912_s0, %s709_s16  ;;  %s19_s13 = int_to_ptr.vmem [resolvable:$true] %s18_s13 }
   0x5   :  { %p713_p1 = scmp.lt.u32.totalorder %s709_s16, %s912_s0 }
   0x7   :  { %p715_p2 = pnand %p713_p1, %p710_p0 }
   0x9   :  { %718 = shalt.err (!%p715_p2)
}
   0xa   :  { %s719_s21 = scalar_lea.vmem %s19_s13, 1024  ;;  %p724_p4 = scmp.lt.s32.totalorder %s19_s13, %s19_s13 }
   0xb   :  { %p720_p3 = scmp.ne.s32.totalorder %s19_s13, %s719_s21  ;;  %p725_p5 = scmp.lt.s32.totalorder %s719_s21, %s719_s21 }
   0xd   :  { %p726_p6 = por %p725_p5, %p724_p4 }
   0xf   :  { %p727_p7 = pnand %p726_p6, %p720_p3 }
  0x11   :  { %730 = shalt.err (!%p727_p7)
}
  0x12   :  { %s806_s22 = smov 64   ;;  %s807_s23 = smov 4  }
  0x13   :  { %24 = dma.hbm_to_vmem [thread:$0]  %s912_s0, 1024, %s19_s13, [#allocation4], %s806_s22, %s806_s22, %s807_s23  }
  0x14   :  { %s808_s26 = smov [#allocation6]   ;;  %s731_s30 = scalar_lea.hbm %s913_s1, 1024 }
  0x15   :  { %s30_s27 = sshll.u32 %s808_s26, 4  ;;  %p732_p8 = scmp.ne.s32.totalorder %s913_s1, %s731_s30  ;;  %s31_s27 = int_to_ptr.vmem [resolvable:$true] %s30_s27 }
  0x16   :  { %p735_p9 = scmp.lt.u32.totalorder %s731_s30, %s913_s1 }
  0x18   :  { %p737_p10 = pnand %p735_p9, %p732_p8 }
  0x1a   :  { %740 = shalt.err (!%p737_p10)
}
  0x1b   :  { %s741_s8 = scalar_lea.vmem %s31_s27, 1024  ;;  %p746_p12 = scmp.lt.s32.totalorder %s31_s27, %s31_s27 }
  0x1c   :  { %p742_p11 = scmp.ne.s32.totalorder %s31_s27, %s741_s8  ;;  %p747_p13 = scmp.lt.s32.totalorder %s741_s8, %s741_s8 }
  0x1e   :  { %p748_p0 = por %p747_p13, %p746_p12 }
  0x20   :  { %p749_p1 = pnand %p748_p0, %p742_p11 }
  0x22   :  { %752 = shalt.err (!%p749_p1)
}
  0x23   :  { %36 = dma.hbm_to_vmem [thread:$0]  %s913_s1, 1024, %s31_s27, [#allocation7], %s806_s22, %s806_s22, %s807_s23  }
  0x24   :  { %797 = dma.done.wait [#allocation4], 1024  }
  0x25   :  { %798 = vsyncadd [#allocation4], 4294966272 }
  0x26   :  { %799 = dma.done.wait [#allocation7], 1024  }
  0x27   :  { %800 = vsyncadd [#allocation7], 4294966272  ;;  %v693_v0 = vld [vmem:[#allocation6] sm:$0xff]   ;;  %v694_v1 = vld [vmem:[#allocation6 + $0x8] sm:$0xff]   ;;  %s809_s1 = smov [#allocation8]  }
  0x28   :  { %639 = vmatprep.subr.bf16.mxu0 %v693_v0  ;;  %671 = vmatprep.subr.bf16.mxu1 %v693_v0  ;;  %v695_v2 = vld [vmem:[#allocation6 + $0x10] sm:$0xff]   ;;  %v696_v3 = vld [vmem:[#allocation6 + $0x18] sm:$0xff]   ;;  %v701_v4 = vld [vmem:[#allocation3] sm:$0xff]   ;;  %s501_s10 = sshll.u32 %s809_s1, 4  ;;  %s502_s10 = int_to_ptr.vmem [resolvable:$true] %s501_s10 }
  0x29   :  { %640 = vmatpush3.bf16.msra.mxu0 %v693_v0  ;;  %679 = vmatpush3.bf16.msra.mxu1 %v693_v0  ;;  %v697_v5 = vld [vmem:[#allocation6 + $0x20] sm:$0xff]   ;;  %v698_v7 = vld [vmem:[#allocation6 + $0x28] sm:$0xff]   ;;  %v699_v8 = vld [vmem:[#allocation6 + $0x30] sm:$0xff]   ;;  %s753_s11 = scalar_lea.vmem %s502_s10, 1024  ;;  %p758_p3 = scmp.lt.s32.totalorder %s502_s10, %s502_s10 }
  0x2a   :  { %641 = vmatprep.subr.bf16.mxu0 %v694_v1  ;;  %672 = vmatprep.subr.bf16.mxu1 %v694_v1  ;;  %v705_v6 = vld [vmem:[#allocation3 + $0x20] sm:$0xff]   ;;  %v700_v9 = vld [vmem:[#allocation6 + $0x38] sm:$0xff]   ;;  %v702_v10 = vld [vmem:[#allocation3 + $0x8] sm:$0xff]   ;;  %p754_p2 = scmp.ne.s32.totalorder %s502_s10, %s753_s11  ;;  %p759_p4 = scmp.lt.s32.totalorder %s753_s11, %s753_s11 }
  0x2b   :  { %655 = vmatprep.mubr.bf16.mxu0 %v701_v4  ;;  %663 = vmatprep.mubr.bf16.mxu1 %v705_v6  ;;  %v706_v11 = vld [vmem:[#allocation3 + $0x28] sm:$0xff]   ;;  %v703_v12 = vld [vmem:[#allocation3 + $0x10] sm:$0xff]   ;;  %v704_v14 = vld [vmem:[#allocation3 + $0x18] sm:$0xff]  }
  0x2c   :  { %v707_v13 = vld [vmem:[#allocation3 + $0x30] sm:$0xff]   ;;  %v708_v15 = vld [vmem:[#allocation3 + $0x38] sm:$0xff]   ;;  %p760_p5 = por %p759_p4, %p758_p3 }
  0x2d   :  { %642 = vmatpush3.bf16.msra.mxu0 %v694_v1  ;;  %680 = vmatpush3.bf16.msra.mxu1 %v694_v1 }
  0x2e   :  { %643 = vmatprep.subr.bf16.mxu0 %v695_v2  ;;  %673 = vmatprep.subr.bf16.mxu1 %v695_v2  ;;  %p761_p6 = pnand %p760_p5, %p754_p2 }
  0x31   :  { %644 = vmatpush3.bf16.msra.mxu0 %v695_v2  ;;  %681 = vmatpush3.bf16.msra.mxu1 %v695_v2 }
  0x32   :  { %645 = vmatprep.subr.bf16.mxu0 %v696_v3  ;;  %674 = vmatprep.subr.bf16.mxu1 %v696_v3 }
  0x35   :  { %646 = vmatpush3.bf16.msra.mxu0 %v696_v3  ;;  %682 = vmatpush3.bf16.msra.mxu1 %v696_v3 }
  0x36   :  { %647 = vmatprep.subr.bf16.mxu0 %v697_v5  ;;  %675 = vmatprep.subr.bf16.mxu1 %v697_v5 }
  0x39   :  { %648 = vmatpush3.bf16.msra.mxu0 %v697_v5  ;;  %683 = vmatpush3.bf16.msra.mxu1 %v697_v5 }
  0x3a   :  { %649 = vmatprep.subr.bf16.mxu0 %v698_v7  ;;  %676 = vmatprep.subr.bf16.mxu1 %v698_v7 }
  0x3d   :  { %650 = vmatpush3.bf16.msra.mxu0 %v698_v7  ;;  %684 = vmatpush3.bf16.msra.mxu1 %v698_v7 }
  0x3e   :  { %651 = vmatprep.subr.bf16.mxu0 %v699_v8  ;;  %677 = vmatprep.subr.bf16.mxu1 %v699_v8 }
  0x41   :  { %652 = vmatpush3.bf16.msra.mxu0 %v699_v8  ;;  %685 = vmatpush3.bf16.msra.mxu1 %v699_v8 }
  0x42   :  { %653 = vmatprep.subr.bf16.mxu0 %v700_v9  ;;  %678 = vmatprep.subr.bf16.mxu1 %v700_v9 }
  0x45   :  { %654 = vmatpush3.bf16.msra.mxu0 %v700_v9  ;;  %686 = vmatpush3.bf16.msra.mxu1 %v700_v9 }
  0x48   :  { %656 = vmatmul.mubr.bf16.vlgmr.msra.gmra.mrb[0].mxu0 %v702_v10  ;;  %664 = vmatmul.mubr.bf16.vlgmr.msra.gmra.mrb[0].mxu1 %v706_v11 }
  0x49   :  { %659 = vmatprep.mubr.bf16.mxu0 %v703_v12  ;;  %667 = vmatprep.mubr.bf16.mxu1 %v707_v13 }
  0x50   :  { %660 = vmatmul.mubr.bf16.gmra.mrb[4].mxu0 %v704_v14  ;;  %668 = vmatmul.mubr.bf16.gmra.mrb[4].mxu1 %v708_v15 }
 0x11b   :  { %v657_v16 = vpop.f32.mrb[0].mxu0  ;;  %v861_v17 = vpop.f32.mrb[0].mxu1 }
 0x11c   :  { %v242_v18 = vpop.f32.mrb[1].mxu0  ;;  %v863_v19 = vpop.f32.mrb[1].mxu1  ;;  %v460_v31 = vmul.f32 %v657_v16, %v657_v16 }
 0x11d   :  { %v658_v20 = vpop.f32.mrb[2].mxu0  ;;  %v865_v21 = vpop.f32.mrb[2].mxu1  ;;  %v458_v22 = vmul.f32 %v242_v18, %v242_v18  ;;  %v466_v61 = vmul.f32 %v863_v19, %v863_v19 }
 0x11e   :  { %v584_v23 = vpack.c.bf16 %v658_v20, %v657_v16  ;;  %v245_v24 = vpop.f32.mrb[3].mxu0  ;;  %v604_v25 = vpack.c.bf16 %v865_v21, %v861_v17  ;;  %v869_v26 = vpop.f32.mrb[3].mxu1  ;;  %v461_v34 = vmul.f32 %v658_v20, %v658_v20 }
 0x11f   :  { %v579_v27 = vpack.c.bf16 %v245_v24, %v242_v18  ;;  %v436_v28 = vadd.f32 %v245_v24, %v242_v18  ;;  %v459_v29 = vmul.f32 %v245_v24, %v245_v24  ;;  %v599_v30 = vpack.c.bf16 %v869_v26, %v863_v19 }
 0x120   :  { %616 = vst [vmem:[#allocation8 + $0x8] sm:$0xff] %v584_v23   ;;  %620 = vst [vmem:[#allocation8 + $0x28] sm:$0xff] %v604_v25  }
 0x121   :  { %580 = vst [vmem:[#allocation8] sm:$0xff] %v579_v27   ;;  %v437_v32 = vadd.f32 %v657_v16, %v436_v28  ;;  %v474_v33 = vadd.f32 %v459_v29, %v458_v22  ;;  %619 = vst [vmem:[#allocation8 + $0x20] sm:$0xff] %v599_v30  }
 0x123   :  { %v475_v35 = vadd.f32 %v474_v33, %v460_v31  ;;  %v661_v36 = vpop.f32.mrb[4].mxu0  ;;  %v438_v37 = vadd.f32 %v658_v20, %v437_v32  ;;  %v669_v38 = vpop.f32.mrb[4].mxu1 }
 0x124   :  { %v258_v39 = vpop.f32.mrb[5].mxu0  ;;  %v290_v40 = vpop.f32.mrb[5].mxu1  ;;  %v464_v55 = vmul.f32 %v661_v36, %v661_v36 }
 0x125   :  { %v439_v41 = vadd.f32 %v438_v37, %v258_v39  ;;  %v462_v42 = vmul.f32 %v258_v39, %v258_v39  ;;  %v476_v43 = vadd.f32 %v475_v35, %v461_v34  ;;  %v662_v44 = vpop.f32.mrb[6].mxu0  ;;  %v670_v45 = vpop.f32.mrb[6].mxu1 }
 0x126   :  { %v594_v46 = vpack.c.bf16 %v662_v44, %v661_v36  ;;  %v261_v47 = vpop.f32.mrb[7].mxu0  ;;  %v614_v48 = vpack.c.bf16 %v670_v45, %v669_v38  ;;  %v293_v49 = vpop.f32.mrb[7].mxu1  ;;  %v465_v58 = vmul.f32 %v662_v44, %v662_v44 }
 0x127   :  { %v477_v50 = vadd.f32 %v476_v43, %v462_v42  ;;  %v589_v51 = vpack.c.bf16 %v261_v47, %v258_v39  ;;  %v440_v52 = vadd.f32 %v439_v41, %v261_v47  ;;  %v463_v53 = vmul.f32 %v261_v47, %v261_v47 }
 0x128   :  { %618 = vst [vmem:[#allocation8 + $0x18] sm:$0xff] %v594_v46   ;;  %622 = vst [vmem:[#allocation8 + $0x38] sm:$0xff] %v614_v48   ;;  %v609_v54 = vpack.c.bf16 %v293_v49, %v290_v40 }
 0x129   :  { %617 = vst [vmem:[#allocation8 + $0x10] sm:$0xff] %v589_v51   ;;  %v441_v56 = vadd.f32 %v661_v36, %v440_v52  ;;  %v478_v57 = vadd.f32 %v477_v50, %v463_v53 }
 0x12a   :  { %621 = vst [vmem:[#allocation8 + $0x30] sm:$0xff] %v609_v54  }
 0x12b   :  { %v479_v59 = vadd.f32 %v478_v57, %v464_v55  ;;  %v442_v60 = vadd.f32 %v662_v44, %v441_v56 }
 0x12c   :  { %764 = shalt.err (!%p761_p6)
}
 0x12d   :  { %s765_s14 = scalar_lea.hbm %s914_s2, 1024 }
 0x12e   :  { %p766_p7 = scmp.ne.s32.totalorder %s914_s2, %s765_s14  ;;  %p769_p8 = scmp.lt.u32.totalorder %s765_s14, %s914_s2 }
 0x130   :  { %p771_p9 = pnand %p769_p8, %p766_p7 }
 0x132   :  { %774 = shalt.err (!%p771_p9)
}
 0x133   :  { %507 = dma.vmem_to_hbm [thread:$0]  %s502_s10, 1024, %s914_s2, [#allocation5], %s806_s22, %s806_s22, %s807_s23   ;;  %v443_v62 = vadd.f32 %v442_v60, %v863_v19  ;;  %v480_v63 = vadd.f32 %v479_v59, %v465_v58  ;;  %v467_v2 = vmul.f32 %v869_v26, %v869_v26  ;;  %v468_v3 = vmul.f32 %v861_v17, %v861_v17 }
 0x134   :  { %v469_v6 = vmul.f32 %v865_v21, %v865_v21  ;;  %v470_v9 = vmul.f32 %v290_v40, %v290_v40  ;;  %v471_v14 = vmul.f32 %v293_v49, %v293_v49  ;;  %v472_v15 = vmul.f32 %v669_v38, %v669_v38  ;;  %s810_s2 = smov [#allocation9]  }
 0x135   :  { %v481_v0 = vadd.f32 %v480_v63, %v466_v61  ;;  %v444_v1 = vadd.f32 %v443_v62, %v869_v26  ;;  %v473_v19 = vmul.f32 %v670_v45, %v670_v45  ;;  %s514_s21 = sshll.u32 %s810_s2, 4  ;;  %s515_s21 = int_to_ptr.vmem [resolvable:$true] %s514_s21 }
 0x136   :  { %s775_s22 = scalar_lea.vmem %s515_s21, 128  ;;  %p780_p11 = scmp.lt.s32.totalorder %s515_s21, %s515_s21 }
 0x137   :  { %v445_v4 = vadd.f32 %v861_v17, %v444_v1  ;;  %v482_v5 = vadd.f32 %v481_v0, %v467_v2  ;;  %p776_p10 = scmp.ne.s32.totalorder %s515_s21, %s775_s22  ;;  %p781_p12 = scmp.lt.s32.totalorder %s775_s22, %s775_s22 }
 0x139   :  { %v483_v7 = vadd.f32 %v482_v5, %v468_v3  ;;  %v446_v8 = vadd.f32 %v865_v21, %v445_v4  ;;  %p782_p13 = por %p781_p12, %p780_p11 }
 0x13b   :  { %v447_v10 = vadd.f32 %v446_v8, %v290_v40  ;;  %v484_v11 = vadd.f32 %v483_v7, %v469_v6  ;;  %p783_p0 = pnand %p782_p13, %p776_p10 }
 0x13d   :  { %v485_v12 = vadd.f32 %v484_v11, %v470_v9  ;;  %v448_v13 = vadd.f32 %v447_v10, %v293_v49 }
 0x13f   :  { %v449_v16 = vadd.f32 %v669_v38, %v448_v13  ;;  %v486_v18 = vadd.f32 %v485_v12, %v471_v14 }
 0x141   :  { %v450_v20 = vadd.f32 %v670_v45, %v449_v16  ;;  %v487_v22 = vadd.f32 %v486_v18, %v472_v15 }
 0x143   :  { %v451_v17 = vrot.slane %v450_v20, 4  ;;  %v488_v23 = vadd.f32 %v487_v22, %v473_v19 }
 0x145   :  { %v452_v24 = vadd.f32 %v451_v17, %v450_v20  ;;  %v489_v25 = vrot.slane %v488_v23, 4 }
 0x147   :  { %v453_v26 = vrot.slane %v452_v24, 2  ;;  %v490_v27 = vadd.f32 %v489_v25, %v488_v23 }
 0x149   :  { %v454_v28 = vadd.f32 %v453_v26, %v452_v24  ;;  %v491_v21 = vrot.slane %v490_v27, 2 }
 0x14b   :  { %v455_v29 = vrot.slane %v454_v28, 1  ;;  %v492_v30 = vadd.f32 %v491_v21, %v490_v27 }
 0x14d   :  { %v456_v31 = vadd.f32 %v455_v29, %v454_v28  ;;  %v493_v32 = vrot.slane %v492_v30, 1 }
 0x14f   :  { %457 = vst [vmem:[#allocation9] sm:$0x1] %v456_v31  ;;  %v494_v33 = vadd.f32 %v493_v32, %v492_v30 }
 0x151   :  { %495 = vst [vmem:[#allocation9 + $0x1] sm:$0x1] %v494_v33 }
 0x152   :  { %786 = shalt.err (!%p783_p0)
}
 0x153   :  { %s787_s25 = scalar_lea.hbm %s915_s3, 128 }
 0x154   :  { %p788_p1 = scmp.ne.s32.totalorder %s915_s3, %s787_s25  ;;  %p791_p2 = scmp.lt.u32.totalorder %s787_s25, %s915_s3 }
 0x156   :  { %p793_p3 = pnand %p791_p2, %p788_p1 }
 0x158   :  { %796 = shalt.err (!%p793_p3)
}
 0x159   :  { %517 = dma.vmem_to_hbm [thread:$0]  %s515_s21, 128, %s915_s3, [#allocation10]  }
 0x15a   :  { %801 = dma.done.wait [#allocation5], 1024  }
 0x15b   :  { %802 = vsyncadd [#allocation5], 4294966272 }
 0x15c   :  { %803 = dma.done.wait [#allocation10], 128  }
 0x15d   :  { %804 = vsyncadd [#allocation10], 4294967168 }
 0x15e   :  { %524 = vsyncpa [#allocation4], 1 }
 0x15f   :  { %525 = vsyncpa [#allocation7], 1 }
 0x160   :  { %526 = vsyncpa [#allocation5], 1 }
 0x161   :  { %527 = vsyncpa [#allocation10], 1 }

</bundles_post_ra>
